<compile_context>
chip_gen: v7x
topology: tpu7x:2x2x1
jax: 0.10.0
libtpu: 0.0.40
codegen_flags: <defaults>
</compile_context>

<pallas_src>
import jax
import jax.numpy as jnp
from jax.experimental import pallas as pl
from jax.experimental.pallas import tpu as pltpu


def make_rnn_chunk_kernel(seq_len: int, t_chunk: int, unroll: int = 8):
    """Builds the per-chunk kernel; seq_len / t_chunk are compile-time consts."""

    def kernel(x_ref, w_ih_ref, w_hh_ref, b_ref, w_fc_ref, b_fc_ref,
               out_ref, h_ref, xp_ref):
        # x_ref:    (T_chunk, B_pad, I)   time-major chunk of the input
        # w_ih_ref: (I, H)                W_ih^T
        # w_hh_ref: (H, H)                W_hh^T
        # b_ref:    (1, H)                b_ih + b_hh
        # w_fc_ref: (H, O_pad)            W_fc^T (lane-padded)
        # b_fc_ref: (1, O_pad)
        # out_ref:  (B_pad, O_pad)
        # h_ref:    (B_pad, H)            carried hidden state (VMEM scratch)
        # xp_ref:   (T_chunk, B_pad, H)   projected chunk (VMEM scratch)
        c = pl.program_id(0)

        @pl.when(c == 0)
        def _():
            h_ref[...] = jnp.zeros_like(h_ref)

        t_c, b_pad, i_dim = x_ref.shape
        h_dim = w_hh_ref.shape[0]

        # ---- Hoisted input projection for this chunk (one big MXU matmul),
        # RNN bias folded in once. Leading-dim merge is a free reshape. -------
        x_flat = x_ref[...].reshape(t_c * b_pad, i_dim)
        xp = jnp.dot(x_flat, w_ih_ref[...], preferred_element_type=jnp.float32)
        xp_ref[...] = (xp + b_ref[...]).reshape(t_c, b_pad, h_dim)

        w_hh = w_hh_ref[...]
        # Number of valid (non-padded) timesteps in this chunk.
        n_valid = jnp.minimum(t_chunk, seq_len - c * t_chunk)

        # ---- Serial recurrence: partially-unrolled fori_loop. Only
        # h @ W_hh + add + tanh is on the per-step critical path. -------------
        # TODO(synk): drive W_hh explicitly (pltpu.matmul_push_rhs once per
        # chunk + matmul_acc_lhs / matmul_pop per step) to keep the RHS
        # resident in the MXU weight registers across timesteps.
        def step(t, h):
            pre = xp_ref[t] + jnp.dot(h, w_hh,
                                      preferred_element_type=jnp.float32)
            h_new = jnp.tanh(pre)
            # Pass h through unchanged on padded timesteps (cheap VPU select).
            return jnp.where(t < n_valid, h_new, h)

        h = jax.lax.fori_loop(0, t_chunk, step, h_ref[...],
                              unroll=max(1, min(unroll, t_chunk)))
        h_ref[...] = h

        # ---- Final FC on the last hidden state (last chunk only). -----------
        @pl.when(c == pl.num_programs(0) - 1)
        def _():
            out_ref[...] = (
                jnp.dot(h, w_fc_ref[...], preferred_element_type=jnp.float32)
                + b_fc_ref[...]).astype(out_ref.dtype)

    return kernel


def rnn_model_forward(x_btI, w_ih, w_hh, b_ih, b_hh, w_fc, b_fc,
                      *, t_chunk_max=128, x_chunk_budget_bytes=8 * 1024 * 1024):
    """x_btI: (B, T, I) float32, batch_first like the PyTorch module."""
    B, T, I = x_btI.shape
    H = w_hh.shape[0]
    O = w_fc.shape[0]
    assert T > 0, "T == 0 would leave the output undefined"

    # Pad batch to the native 8-sublane tile so h / vreg ops are unmasked.
    B_pad = max(8, ((B + 7) // 8) * 8)
    # Pad output lanes to 128 so the final store is full-lane (vst, not vst.msk).
    O_pad = max(128, ((O + 127) // 128) * 128)

    # Pick a T chunk: big enough to amortize per-step grid overhead, small
    # enough that the double-buffered x chunk fits a modest VMEM budget.
    bytes_per_step = 2 * B_pad * I * 4            # x chunk, double-buffered
    t_chunk = max(1, min(t_chunk_max, x_chunk_budget_bytes // bytes_per_step))
    t_chunk = min(t_chunk, T)
    n_chunks = pl.cdiv(T, t_chunk)
    T_pad = n_chunks * t_chunk

    # Time-major layout so the per-chunk projection reshape is free and the
    # per-step slice is a contiguous (8, H) tile.
    x_tbi = jnp.transpose(x_btI, (1, 0, 2))                      # (T, B, I)
    x_tbi = jnp.pad(x_tbi, ((0, T_pad - T), (0, B_pad - B), (0, 0)))

    # Weight prep: pre-transposed to (in, out); RNN biases fused; FC padded.
    w_ih_t = jnp.transpose(w_ih)                                 # (I, H)
    w_hh_t = jnp.transpose(w_hh)                                 # (H, H)
    b_rnn = (b_ih + b_hh).reshape(1, H)                          # (1, H)
    w_fc_t = jnp.pad(jnp.transpose(w_fc), ((0, 0), (0, O_pad - O)))   # (H, O_pad)
    b_fc_p = jnp.pad(b_fc, (0, O_pad - O)).reshape(1, O_pad)          # (1, O_pad)

    kernel = make_rnn_chunk_kernel(T, t_chunk, unroll=8)

    grid_spec = pltpu.PrefetchScalarGridSpec(
        num_scalar_prefetch=0,
        grid=(n_chunks,),
        in_specs=[
            pl.BlockSpec((t_chunk, B_pad, I), lambda c: (c, 0, 0)),  # x chunk
            pl.BlockSpec((I, H), lambda c: (0, 0)),                  # W_ih^T
            pl.BlockSpec((H, H), lambda c: (0, 0)),                  # W_hh^T
            pl.BlockSpec((1, H), lambda c: (0, 0)),                  # b_ih+b_hh
            pl.BlockSpec((H, O_pad), lambda c: (0, 0)),              # W_fc^T
            pl.BlockSpec((1, O_pad), lambda c: (0, 0)),              # b_fc
        ],
        out_specs=pl.BlockSpec((B_pad, O_pad), lambda c: (0, 0)),
        scratch_shapes=[
            pltpu.VMEM((B_pad, H), jnp.float32),            # carried h
            pltpu.VMEM((t_chunk, B_pad, H), jnp.float32),   # projected chunk
        ],
    )

    out_padded = pl.pallas_call(
        kernel,
        out_shape=jax.ShapeDtypeStruct((B_pad, O_pad), jnp.float32),
        grid_spec=grid_spec,
        compiler_params=pltpu.CompilerParams(
            dimension_semantics=("arbitrary",),          # serial recurrence
            vmem_limit_bytes=32 * 1024 * 1024,
        ),
    )(x_tbi, w_ih_t, w_hh_t, b_rnn, w_fc_t, b_fc_p)

    return out_padded[:B, :O]


def rnn_model_reference(x_btI, w_ih, w_hh, b_ih, b_hh, w_fc, b_fc):
    """Pure-JAX reference matching torch.nn.RNN(batch_first=True) + Linear."""
    B, T, I = x_btI.shape
    H = w_hh.shape[0]
    h = jnp.zeros((B, H), jnp.float32)

    def step(h, x_t):
        h_new = jnp.tanh(x_t @ w_ih.T + b_ih + h @ w_hh.T + b_hh)
        return h_new, None

    h_last, _ = jax.lax.scan(step, h, jnp.transpose(x_btI, (1, 0, 2)))
    return h_last @ w_fc.T + b_fc


if __name__ == "__main__":
    # Small shapes consistent with the module (hidden_size=128 from the spec;
    # input_size / seq-len scaled down for the test).
    B, T, I, H, O = 4, 8, 256, 128, 16

    key = jax.random.PRNGKey(0)
    ks = jax.random.split(key, 6)
    bound = 1.0 / jnp.sqrt(H)
    # PyTorch nn.RNN / nn.Linear default init: U(-1/sqrt(H), 1/sqrt(H))
    w_ih = jax.random.uniform(ks[0], (H, I), jnp.float32, -bound, bound)
    w_hh = jax.random.uniform(ks[1], (H, H), jnp.float32, -bound, bound)
    b_ih = jax.random.uniform(ks[2], (H,), jnp.float32, -bound, bound)
    b_hh = jax.random.uniform(ks[3], (H,), jnp.float32, -bound, bound)
    w_fc = jax.random.uniform(ks[4], (O, H), jnp.float32, -bound, bound)
    b_fc = jax.random.uniform(ks[5], (O,), jnp.float32, -bound, bound)

    x = jax.random.normal(jax.random.PRNGKey(1), (B, T, I), jnp.float32)

    out = rnn_model_forward(x, w_ih, w_hh, b_ih, b_hh, w_fc, b_fc)
    out = jax.block_until_ready(out)

    ref = rnn_model_reference(x, w_ih, w_hh, b_ih, b_hh, w_fc, b_fc)
    assert out.shape == (B, O)
    assert jnp.allclose(out, ref, atol=1e-4, rtol=1e-4), "mismatch vs reference"

    print("KERNEL_OK")
</pallas_src>

<mosaic_0001>
module attributes {stable_mosaic.version = 11 : i64} {
  func.func @kernel(%arg0: i32, %arg1: memref<8x8x256xf32, #tpu.memory_space<vmem>>, %arg2: memref<256x128xf32, #tpu.memory_space<vmem>>, %arg3: memref<128x128xf32, #tpu.memory_space<vmem>>, %arg4: memref<1x128xf32, #tpu.memory_space<vmem>>, %arg5: memref<128x128xf32, #tpu.memory_space<vmem>>, %arg6: memref<1x128xf32, #tpu.memory_space<vmem>>, %arg7: memref<8x128xf32, #tpu.memory_space<vmem>>, %arg8: memref<8x128xf32, #tpu.memory_space<vmem>>, %arg9: memref<8x8x128xf32, #tpu.memory_space<vmem>>) attributes {dimension_semantics = [#tpu.dimension_semantics<arbitrary>], iteration_bounds = array<i64: 1>, scalar_prefetch = 0 : i64, scratch_operands = 2 : i64, tpu.core_type = #tpu.core_type<tc>, window_params = [{transform_indices = @transform_0, window_bounds = array<i64: 8, 8, 256>}, {pipeline_mode = #tpu.pipeline_mode<synchronous>, transform_indices = @transform_1, window_bounds = array<i64: 256, 128>}, {pipeline_mode = #tpu.pipeline_mode<synchronous>, transform_indices = @transform_2, window_bounds = array<i64: 128, 128>}, {pipeline_mode = #tpu.pipeline_mode<synchronous>, transform_indices = @transform_3, window_bounds = array<i64: 1, 128>}, {pipeline_mode = #tpu.pipeline_mode<synchronous>, transform_indices = @transform_4, window_bounds = array<i64: 128, 128>}, {pipeline_mode = #tpu.pipeline_mode<synchronous>, transform_indices = @transform_5, window_bounds = array<i64: 1, 128>}, {pipeline_mode = #tpu.pipeline_mode<synchronous>, transform_indices = @transform_6, window_bounds = array<i64: 8, 128>}]} {
    %c0_i32 = arith.constant 0 : i32
    %0 = arith.cmpi eq, %arg0, %c0_i32 : i32
    %1 = arith.extui %0 : i1 to i32
    %c0_i32_0 = arith.constant 0 : i32
    %2 = arith.cmpi ne, %1, %c0_i32_0 : i32
    scf.if %2 {
      %cst_46 = arith.constant 0.000000e+00 : f32
      %85 = vector.broadcast %cst_46 : f32 to vector<8x128xf32>
      %c0_47 = arith.constant 0 : index
      %c0_48 = arith.constant 0 : index
      %86 = vector.load %arg8[%c0_47, %c0_48] : memref<8x128xf32, #tpu.memory_space<vmem>>, vector<8x128xf32>
      tpu.vector_store %arg8[%c0_47, %c0_48], %85 {strides = array<i32>} : memref<8x128xf32, #tpu.memory_space<vmem>>, vector<8x128xf32>,
    } else {
    }
    %c0 = arith.constant 0 : index
    %c0_1 = arith.constant 0 : index
    %c0_2 = arith.constant 0 : index
    %3 = vector.load %arg1[%c0, %c0_1, %c0_2] : memref<8x8x256xf32, #tpu.memory_space<vmem>>, vector<8x8x256xf32>
    %4 = vector.shape_cast %3 : vector<8x8x256xf32> to vector<64x256xf32>
    %c0_3 = arith.constant 0 : index
    %c0_4 = arith.constant 0 : index
    %5 = vector.load %arg2[%c0_3, %c0_4] : memref<256x128xf32, #tpu.memory_space<vmem>>, vector<256x128xf32>
    %cst = arith.constant dense<0.000000e+00> : vector<64x128xf32>
    %6 = tpu.matmul %4, %5, %cst {dimension_numbers = #tpu.dot_dimension_numbers<[1], [0], [0], [1], [0, 0, 1, 1], [], []>} : vector<64x256xf32>, vector<256x128xf32>, vector<64x128xf32> -> vector<64x128xf32>
    %c0_5 = arith.constant 0 : index
    %c0_6 = arith.constant 0 : index
    %7 = vector.load %arg4[%c0_5, %c0_6] : memref<1x128xf32, #tpu.memory_space<vmem>>, vector<1x128xf32>
    %8 = vector.broadcast %7 : vector<1x128xf32> to vector<64x128xf32>
    %9 = arith.addf %6, %8 : vector<64x128xf32>
    %10 = vector.shape_cast %9 : vector<64x128xf32> to vector<8x8x128xf32>
    %c0_7 = arith.constant 0 : index
    %c0_8 = arith.constant 0 : index
    %c0_9 = arith.constant 0 : index
    %11 = vector.load %arg9[%c0_7, %c0_8, %c0_9] : memref<8x8x128xf32, #tpu.memory_space<vmem>>, vector<8x8x128xf32>
    tpu.vector_store %arg9[%c0_7, %c0_8, %c0_9], %10 {strides = array<i32>} : memref<8x8x128xf32, #tpu.memory_space<vmem>>, vector<8x8x128xf32>,
    %c0_10 = arith.constant 0 : index
    %c0_11 = arith.constant 0 : index
    %12 = vector.load %arg3[%c0_10, %c0_11] : memref<128x128xf32, #tpu.memory_space<vmem>>, vector<128x128xf32>
    %c8_i32 = arith.constant 8 : i32
    %13 = arith.muli %arg0, %c8_i32 : i32
    %c8_i32_12 = arith.constant 8 : i32
    %14 = arith.subi %c8_i32_12, %13 : i32
    %c8_i32_13 = arith.constant 8 : i32
    %15 = arith.minsi %c8_i32_13, %14 : i32
    %c0_14 = arith.constant 0 : index
    %c0_15 = arith.constant 0 : index
    %16 = vector.load %arg8[%c0_14, %c0_15] : memref<8x128xf32, #tpu.memory_space<vmem>>, vector<8x128xf32>
    %c0_i32_16 = arith.constant 0 : i32
    %17 = arith.index_cast %c0_i32_16 : i32 to index
    %c0_17 = arith.constant 0 : index
    %c0_18 = arith.constant 0 : index
    %18 = vector.load %arg9[%17, %c0_17, %c0_18] : memref<8x8x128xf32, #tpu.memory_space<vmem>>, vector<1x8x128xf32>
    %19 = vector.shape_cast %18 : vector<1x8x128xf32> to vector<8x128xf32>
    %cst_19 = arith.constant dense<0.000000e+00> : vector<8x128xf32>
    %20 = tpu.matmul %16, %12, %cst_19 {dimension_numbers = #tpu.dot_dimension_numbers<[1], [0], [0], [1], [0, 0, 1, 1], [], []>} : vector<8x128xf32>, vector<128x128xf32>, vector<8x128xf32> -> vector<8x128xf32>
    %21 = arith.addf %19, %20 : vector<8x128xf32>
    %22 = math.tanh %21 : vector<8x128xf32>
    %23 = arith.cmpi slt, %c0_i32_16, %15 : i32
    %24 = arith.select %23, %22, %16 : vector<8x128xf32>
    %c1_i32 = arith.constant 1 : i32
    %25 = arith.index_cast %c1_i32 : i32 to index
    %c0_20 = arith.constant 0 : index
    %c0_21 = arith.constant 0 : index
    %26 = vector.load %arg9[%25, %c0_20, %c0_21] : memref<8x8x128xf32, #tpu.memory_space<vmem>>, vector<1x8x128xf32>
    %27 = vector.shape_cast %26 : vector<1x8x128xf32> to vector<8x128xf32>
    %cst_22 = arith.constant dense<0.000000e+00> : vector<8x128xf32>
    %28 = tpu.matmul %24, %12, %cst_22 {dimension_numbers = #tpu.dot_dimension_numbers<[1], [0], [0], [1], [0, 0, 1, 1], [], []>} : vector<8x128xf32>, vector<128x128xf32>, vector<8x128xf32> -> vector<8x128xf32>
    %29 = arith.addf %27, %28 : vector<8x128xf32>
    %30 = math.tanh %29 : vector<8x128xf32>
    %31 = arith.cmpi slt, %c1_i32, %15 : i32
    %32 = arith.select %31, %30, %24 : vector<8x128xf32>
    %c2_i32 = arith.constant 2 : i32
    %33 = arith.index_cast %c2_i32 : i32 to index
    %c0_23 = arith.constant 0 : index
    %c0_24 = arith.constant 0 : index
    %34 = vector.load %arg9[%33, %c0_23, %c0_24] : memref<8x8x128xf32, #tpu.memory_space<vmem>>, vector<1x8x128xf32>
    %35 = vector.shape_cast %34 : vector<1x8x128xf32> to vector<8x128xf32>
    %cst_25 = arith.constant dense<0.000000e+00> : vector<8x128xf32>
    %36 = tpu.matmul %32, %12, %cst_25 {dimension_numbers = #tpu.dot_dimension_numbers<[1], [0], [0], [1], [0, 0, 1, 1], [], []>} : vector<8x128xf32>, vector<128x128xf32>, vector<8x128xf32> -> vector<8x128xf32>
    %37 = arith.addf %35, %36 : vector<8x128xf32>
    %38 = math.tanh %37 : vector<8x128xf32>
    %39 = arith.cmpi slt, %c2_i32, %15 : i32
    %40 = arith.select %39, %38, %32 : vector<8x128xf32>
    %c3_i32 = arith.constant 3 : i32
    %41 = arith.index_cast %c3_i32 : i32 to index
    %c0_26 = arith.constant 0 : index
    %c0_27 = arith.constant 0 : index
    %42 = vector.load %arg9[%41, %c0_26, %c0_27] : memref<8x8x128xf32, #tpu.memory_space<vmem>>, vector<1x8x128xf32>
    %43 = vector.shape_cast %42 : vector<1x8x128xf32> to vector<8x128xf32>
    %cst_28 = arith.constant dense<0.000000e+00> : vector<8x128xf32>
    %44 = tpu.matmul %40, %12, %cst_28 {dimension_numbers = #tpu.dot_dimension_numbers<[1], [0], [0], [1], [0, 0, 1, 1], [], []>} : vector<8x128xf32>, vector<128x128xf32>, vector<8x128xf32> -> vector<8x128xf32>
    %45 = arith.addf %43, %44 : vector<8x128xf32>
    %46 = math.tanh %45 : vector<8x128xf32>
    %47 = arith.cmpi slt, %c3_i32, %15 : i32
    %48 = arith.select %47, %46, %40 : vector<8x128xf32>
    %c4_i32 = arith.constant 4 : i32
    %49 = arith.index_cast %c4_i32 : i32 to index
    %c0_29 = arith.constant 0 : index
    %c0_30 = arith.constant 0 : index
    %50 = vector.load %arg9[%49, %c0_29, %c0_30] : memref<8x8x128xf32, #tpu.memory_space<vmem>>, vector<1x8x128xf32>
    %51 = vector.shape_cast %50 : vector<1x8x128xf32> to vector<8x128xf32>
    %cst_31 = arith.constant dense<0.000000e+00> : vector<8x128xf32>
    %52 = tpu.matmul %48, %12, %cst_31 {dimension_numbers = #tpu.dot_dimension_numbers<[1], [0], [0], [1], [0, 0, 1, 1], [], []>} : vector<8x128xf32>, vector<128x128xf32>, vector<8x128xf32> -> vector<8x128xf32>
    %53 = arith.addf %51, %52 : vector<8x128xf32>
    %54 = math.tanh %53 : vector<8x128xf32>
    %55 = arith.cmpi slt, %c4_i32, %15 : i32
    %56 = arith.select %55, %54, %48 : vector<8x128xf32>
    %c5_i32 = arith.constant 5 : i32
    %57 = arith.index_cast %c5_i32 : i32 to index
    %c0_32 = arith.constant 0 : index
    %c0_33 = arith.constant 0 : index
    %58 = vector.load %arg9[%57, %c0_32, %c0_33] : memref<8x8x128xf32, #tpu.memory_space<vmem>>, vector<1x8x128xf32>
    %59 = vector.shape_cast %58 : vector<1x8x128xf32> to vector<8x128xf32>
    %cst_34 = arith.constant dense<0.000000e+00> : vector<8x128xf32>
    %60 = tpu.matmul %56, %12, %cst_34 {dimension_numbers = #tpu.dot_dimension_numbers<[1], [0], [0], [1], [0, 0, 1, 1], [], []>} : vector<8x128xf32>, vector<128x128xf32>, vector<8x128xf32> -> vector<8x128xf32>
    %61 = arith.addf %59, %60 : vector<8x128xf32>
    %62 = math.tanh %61 : vector<8x128xf32>
    %63 = arith.cmpi slt, %c5_i32, %15 : i32
    %64 = arith.select %63, %62, %56 : vector<8x128xf32>
    %c6_i32 = arith.constant 6 : i32
    %65 = arith.index_cast %c6_i32 : i32 to index
    %c0_35 = arith.constant 0 : index
    %c0_36 = arith.constant 0 : index
    %66 = vector.load %arg9[%65, %c0_35, %c0_36] : memref<8x8x128xf32, #tpu.memory_space<vmem>>, vector<1x8x128xf32>
    %67 = vector.shape_cast %66 : vector<1x8x128xf32> to vector<8x128xf32>
    %cst_37 = arith.constant dense<0.000000e+00> : vector<8x128xf32>
    %68 = tpu.matmul %64, %12, %cst_37 {dimension_numbers = #tpu.dot_dimension_numbers<[1], [0], [0], [1], [0, 0, 1, 1], [], []>} : vector<8x128xf32>, vector<128x128xf32>, vector<8x128xf32> -> vector<8x128xf32>
    %69 = arith.addf %67, %68 : vector<8x128xf32>
    %70 = math.tanh %69 : vector<8x128xf32>
    %71 = arith.cmpi slt, %c6_i32, %15 : i32
    %72 = arith.select %71, %70, %64 : vector<8x128xf32>
    %c7_i32 = arith.constant 7 : i32
    %73 = arith.index_cast %c7_i32 : i32 to index
    %c0_38 = arith.constant 0 : index
    %c0_39 = arith.constant 0 : index
    %74 = vector.load %arg9[%73, %c0_38, %c0_39] : memref<8x8x128xf32, #tpu.memory_space<vmem>>, vector<1x8x128xf32>
    %75 = vector.shape_cast %74 : vector<1x8x128xf32> to vector<8x128xf32>
    %cst_40 = arith.constant dense<0.000000e+00> : vector<8x128xf32>
    %76 = tpu.matmul %72, %12, %cst_40 {dimension_numbers = #tpu.dot_dimension_numbers<[1], [0], [0], [1], [0, 0, 1, 1], [], []>} : vector<8x128xf32>, vector<128x128xf32>, vector<8x128xf32> -> vector<8x128xf32>
    %77 = arith.addf %75, %76 : vector<8x128xf32>
    %78 = math.tanh %77 : vector<8x128xf32>
    %79 = arith.cmpi slt, %c7_i32, %15 : i32
    %80 = arith.select %79, %78, %72 : vector<8x128xf32>
    %c8_i32_41 = arith.constant 8 : i32
    %c0_42 = arith.constant 0 : index
    %c0_43 = arith.constant 0 : index
    %81 = vector.load %arg8[%c0_42, %c0_43] : memref<8x128xf32, #tpu.memory_space<vmem>>, vector<8x128xf32>
    tpu.vector_store %arg8[%c0_42, %c0_43], %80 {strides = array<i32>} : memref<8x128xf32, #tpu.memory_space<vmem>>, vector<8x128xf32>,
    %c0_i32_44 = arith.constant 0 : i32
    %82 = arith.cmpi eq, %arg0, %c0_i32_44 : i32
    %83 = arith.extui %82 : i1 to i32
    %c0_i32_45 = arith.constant 0 : i32
    %84 = arith.cmpi ne, %83, %c0_i32_45 : i32
    scf.if %84 {
      %c0_46 = arith.constant 0 : index
      %c0_47 = arith.constant 0 : index
      %85 = vector.load %arg5[%c0_46, %c0_47] : memref<128x128xf32, #tpu.memory_space<vmem>>, vector<128x128xf32>
      %cst_48 = arith.constant dense<0.000000e+00> : vector<8x128xf32>
      %86 = tpu.matmul %80, %85, %cst_48 {dimension_numbers = #tpu.dot_dimension_numbers<[1], [0], [0], [1], [0, 0, 1, 1], [], []>} : vector<8x128xf32>, vector<128x128xf32>, vector<8x128xf32> -> vector<8x128xf32>
      %c0_49 = arith.constant 0 : index
      %c0_50 = arith.constant 0 : index
      %87 = vector.load %arg6[%c0_49, %c0_50] : memref<1x128xf32, #tpu.memory_space<vmem>>, vector<1x128xf32>
      %88 = vector.broadcast %87 : vector<1x128xf32> to vector<8x128xf32>
      %89 = arith.addf %86, %88 : vector<8x128xf32>
      %c0_51 = arith.constant 0 : index
      %c0_52 = arith.constant 0 : index
      %90 = vector.load %arg7[%c0_51, %c0_52] : memref<8x128xf32, #tpu.memory_space<vmem>>, vector<8x128xf32>
      tpu.vector_store %arg7[%c0_51, %c0_52], %89 {strides = array<i32>} : memref<8x128xf32, #tpu.memory_space<vmem>>, vector<8x128xf32>,
    } else {
    }
    return
  }
  func.func @transform_0(%arg0: i32) -> (i32, i32, i32) {
    %c0_i32 = arith.constant 0 : i32
    %c0_i32_0 = arith.constant 0 : i32
    %c0_i32_1 = arith.constant 0 : i32
    return %arg0, %c0_i32, %c0_i32_0 : i32, i32, i32
  }
  func.func @transform_1(%arg0: i32) -> (i32, i32) {
    %c0_i32 = arith.constant 0 : i32
    %c0_i32_0 = arith.constant 0 : i32
    %c0_i32_1 = arith.constant 0 : i32
    return %c0_i32, %c0_i32_0 : i32, i32
  }
  func.func @transform_2(%arg0: i32) -> (i32, i32) {
    %c0_i32 = arith.constant 0 : i32
    %c0_i32_0 = arith.constant 0 : i32
    %c0_i32_1 = arith.constant 0 : i32
    return %c0_i32, %c0_i32_0 : i32, i32
  }
  func.func @transform_3(%arg0: i32) -> (i32, i32) {
    %c0_i32 = arith.constant 0 : i32
    %c0_i32_0 = arith.constant 0 : i32
    %c0_i32_1 = arith.constant 0 : i32
    return %c0_i32, %c0_i32_0 : i32, i32
  }
  func.func @transform_4(%arg0: i32) -> (i32, i32) {
    %c0_i32 = arith.constant 0 : i32
    %c0_i32_0 = arith.constant 0 : i32
    %c0_i32_1 = arith.constant 0 : i32
    return %c0_i32, %c0_i32_0 : i32, i32
  }
  func.func @transform_5(%arg0: i32) -> (i32, i32) {
    %c0_i32 = arith.constant 0 : i32
    %c0_i32_0 = arith.constant 0 : i32
    %c0_i32_1 = arith.constant 0 : i32
    return %c0_i32, %c0_i32_0 : i32, i32
  }
  func.func @transform_6(%arg0: i32) -> (i32, i32) {
    %c0_i32 = arith.constant 0 : i32
    %c0_i32_0 = arith.constant 0 : i32
    %c0_i32_1 = arith.constant 0 : i32
    return %c0_i32, %c0_i32_0 : i32, i32
  }
}

</mosaic_0001>

<bundles_post_ra>
// kernel: tpu_custom_call.1
= control target key start
LH: loop header
LB: loop body
LE: loop exit
PB: predicated region body
PF: predicated region fallthrough
CT: control target
= control target key end

     0   :  { %11 = vsyncpa [#allocation5], 0  ;;  %s2264_s0 = inlined_call_operand.hbm [shape: f32[8,8,256], index: 0, kind: input, shape index: {}]   ;;  %s2265_s1 = inlined_call_operand.hbm [shape: f32[256,128], index: 1, kind: input, shape index: {}]   ;;  %s2266_s2 = inlined_call_operand.hbm [shape: f32[128,128], index: 2, kind: input, shape index: {}]   ;;  %s2267_s3 = inlined_call_operand.vmem [shape: f32[1,128], index: 3, kind: input, shape index: {}]   ;;  %s2268_s4 = inlined_call_operand.hbm [shape: f32[128,128], index: 4, kind: input, shape index: {}]   ;;  %s2269_s5 = inlined_call_operand.vmem [shape: f32[1,128], index: 5, kind: input, shape index: {}]   ;;  %s2270_s6 = inlined_call_operand.hbm [shape: f32[8,128], index: 6, kind: output, shape index: {}]  }
   0x1   :  { %12 = vsyncpa [#allocation8], 0 }
   0x2   :  { %13 = vsyncpa [#allocation11], 0 }
   0x3   :  { %14 = vsyncpa [#allocation6], 0  ;;  %s1939_s21 = smov [#allocation7]   ;;  %s1821_s25 = scalar_lea.hbm %s2265_s1, 4096 }
   0x4   :  { %s32_s22 = sshll.u32 %s1939_s21, 4  ;;  %p1822_p0 = scmp.ne.s32.totalorder %s2265_s1, %s1821_s25  ;;  %s33_s22 = int_to_ptr.vmem [resolvable:$true] %s32_s22 }
   0x5   :  { %p1825_p1 = scmp.lt.u32.totalorder %s1821_s25, %s2265_s1 }
   0x7   :  { %p1827_p2 = pnand %p1825_p1, %p1822_p0 }
   0x9   :  { %1830 = shalt.err (!%p1827_p2)
}
   0xa   :  { %s1831_s30 = scalar_lea.vmem %s33_s22, 4096  ;;  %p1836_p4 = scmp.lt.s32.totalorder %s33_s22, %s33_s22 }
   0xb   :  { %p1832_p3 = scmp.ne.s32.totalorder %s33_s22, %s1831_s30  ;;  %p1837_p5 = scmp.lt.s32.totalorder %s1831_s30, %s1831_s30 }
   0xd   :  { %p1838_p6 = por %p1837_p5, %p1836_p4 }
   0xf   :  { %p1839_p7 = pnand %p1838_p6, %p1832_p3 }
  0x11   :  { %1842 = shalt.err (!%p1839_p7)
}
  0x12   :  { %s1940_s7 = smov 128   ;;  %s1941_s8 = smov 8  }
  0x13   :  { %38 = dma.hbm_to_vmem [thread:$0]  %s2265_s1, 4096, %s33_s22, [#allocation8], %s1940_s7, %s1940_s7, %s1941_s8  }
  0x14   :  { %s1942_s11 = smov [#allocation4]   ;;  %s1843_s15 = scalar_lea.hbm %s2264_s0, 2048 }
  0x15   :  { %s20_s12 = sshll.u32 %s1942_s11, 4  ;;  %p1844_p8 = scmp.ne.s32.totalorder %s2264_s0, %s1843_s15  ;;  %s21_s12 = int_to_ptr.vmem [resolvable:$true] %s20_s12 }
  0x16   :  { %p1847_p9 = scmp.lt.u32.totalorder %s1843_s15, %s2264_s0 }
  0x18   :  { %p1849_p10 = pnand %p1847_p9, %p1844_p8 }
  0x1a   :  { %1852 = shalt.err (!%p1849_p10)
}
  0x1b   :  { %s1853_s20 = scalar_lea.vmem %s21_s12, 2048  ;;  %p1858_p12 = scmp.lt.s32.totalorder %s21_s12, %s21_s12 }
  0x1c   :  { %p1854_p11 = scmp.ne.s32.totalorder %s21_s12, %s1853_s20  ;;  %p1859_p13 = scmp.lt.s32.totalorder %s1853_s20, %s1853_s20 }
  0x1e   :  { %p1860_p0 = por %p1859_p13, %p1858_p12 }
  0x20   :  { %p1861_p1 = pnand %p1860_p0, %p1854_p11 }
  0x22   :  { %1864 = shalt.err (!%p1861_p1)
}
  0x23   :  { %s1943_s1 = smov 256   ;;  %s1944_s21 = smov 16  }
  0x24   :  { %26 = dma.hbm_to_vmem [thread:$0]  %s2264_s0, 2048, %s21_s12, [#allocation5], %s1943_s1, %s1943_s1, %s1944_s21  }
  0x25   :  { %s1945_s24 = smov [#allocation9]   ;;  %s1946_s26 = smov [#allocation10]  }
  0x26   :  { %s44_s25 = sshll.u32 %s1945_s24, 4  ;;  %s58_s27 = sshll.u32 %s1946_s26, 4  ;;  %s45_s25 = int_to_ptr.vmem [resolvable:$true] %s44_s25  ;;  %s2013_s27 = int_to_ptr.vmem [resolvable:$true] %s58_s27 }
  0x27   :  { %s1865_s30 = scalar_lea.hbm %s2266_s2, 2048 }
  0x28   :  { %p1866_p2 = scmp.ne.s32.totalorder %s2266_s2, %s1865_s30  ;;  %p1869_p3 = scmp.lt.u32.totalorder %s1865_s30, %s2266_s2 }
  0x2a   :  { %p1871_p4 = pnand %p1869_p3, %p1866_p2 }
  0x2c   :  { %1874 = shalt.err (!%p1871_p4)
}
  0x2d   :  { %s1875_s0 = scalar_lea.vmem %s45_s25, 2048  ;;  %p1880_p6 = scmp.lt.s32.totalorder %s45_s25, %s45_s25 }
  0x2e   :  { %p1876_p5 = scmp.ne.s32.totalorder %s45_s25, %s1875_s0  ;;  %p1881_p7 = scmp.lt.s32.totalorder %s1875_s0, %s1875_s0 }
  0x30   :  { %p1882_p8 = por %p1881_p7, %p1880_p6 }
  0x32   :  { %p1883_p9 = pnand %p1882_p8, %p1876_p5 }
  0x34   :  { %1886 = shalt.err (!%p1883_p9)
}
  0x35   :  { %50 = dma.hbm_to_vmem [thread:$0]  %s2266_s2, 2048, %s45_s25, [#allocation8], %s1940_s7, %s1940_s7, %s1941_s8  }
  0x36   :  { %s1887_s17 = scalar_lea.hbm %s2268_s4, 2048 }
  0x37   :  { %p1888_p10 = scmp.ne.s32.totalorder %s2268_s4, %s1887_s17  ;;  %p1891_p11 = scmp.lt.u32.totalorder %s1887_s17, %s2268_s4 }
  0x39   :  { %p1893_p12 = pnand %p1891_p11, %p1888_p10 }
  0x3b   :  { %1896 = shalt.err (!%p1893_p12)
}
  0x3c   :  { %s1897_s21 = scalar_lea.vmem %s2013_s27, 2048  ;;  %p1902_p0 = scmp.lt.s32.totalorder %s2013_s27, %s2013_s27 }
  0x3d   :  { %p1898_p13 = scmp.ne.s32.totalorder %s2013_s27, %s1897_s21  ;;  %p1903_p1 = scmp.lt.s32.totalorder %s1897_s21, %s1897_s21 }
  0x3f   :  { %p1904_p2 = por %p1903_p1, %p1902_p0 }
  0x41   :  { %p1905_p3 = pnand %p1904_p2, %p1898_p13 }
  0x43   :  { %1908 = shalt.err (!%p1905_p3)
}
  0x44   :  { %64 = dma.hbm_to_vmem [thread:$0]  %s2268_s4, 2048, %s2013_s27, [#allocation11], %s1940_s7, %s1940_s7, %s1941_s8  }
  0x45   :  { %1931 = dma.done.wait [#allocation5], 2048  }
  0x46   :  { %1932 = vsyncadd [#allocation5], 4294965248 }
  0x47   :  { %1933 = dma.done.wait [#allocation8], 6144  }
  0x48   :  { %1934 = vsyncadd [#allocation8], 4294961152 }
  0x49   :  { %1935 = dma.done.wait [#allocation11], 2048  }
  0x4a   :  { %1936 = vsyncadd [#allocation11], 4294965248  ;;  %v1947_v0 = vmov 0.0|0.0   ;;  %vm1948_vm0 = vmmov 0   ;;  %v1949_v1 = vmov 0.0   ;;  %v116_v2 = vld [vmem:[#allocation7 + $0x80] sm:$0xff] }
  0x4b   :  { %1577 = vmatprep.subr.bf16.mxu1 %v1947_v0  ;;  %1262 = vmatprep.mubr.msk.f32.mxu1 %vm1948_vm0, %v1949_v1  ;;  %v117_v3 = vld [vmem:[#allocation7 + $0x88] sm:$0xff]  ;;  %v100_v4 = vld [vmem:[#allocation7] sm:$0xff]  ;;  %v118_v7 = vld [vmem:[#allocation7 + $0x90] sm:$0xff]  ;;  %s1950_s23 = smov [#allocation12]  }
  0x4c   :  { %v1545_v5 = vpack.c.bf16 %v117_v3, %v116_v2  ;;  %v101_v6 = vld [vmem:[#allocation7 + $0x8] sm:$0xff]  ;;  %v119_v8 = vld [vmem:[#allocation7 + $0x98] sm:$0xff]  ;;  %v102_v11 = vld [vmem:[#allocation7 + $0x10] sm:$0xff]  ;;  %s1008_s24 = sshll.u32 %s1950_s23, 4  ;;  %s1009_s24 = int_to_ptr.vmem [resolvable:$true] %s1008_s24 }
  0x4d   :  { %v1547_v9 = vpack.c.bf16 %v101_v6, %v100_v4  ;;  %v1549_v10 = vpack.c.bf16 %v119_v8, %v118_v7  ;;  %v103_v12 = vld [vmem:[#allocation7 + $0x18] sm:$0xff]  ;;  %v252_v13 = vld [vmem:[#allocation9] sm:$0xff]  ;;  %v253_v14 = vld [vmem:[#allocation9 + $0x8] sm:$0xff]  ;;  %s1909_s25 = scalar_lea.vmem %s1009_s24, 128  ;;  %p1914_p5 = scmp.lt.s32.totalorder %s1009_s24, %s1009_s24 }
  0x4e   :  { %1546 = vmatprep.subr.bf16.mxu0 %v1545_v5  ;;  %v120_v15 = vld [vmem:[#allocation7 + $0xa0] sm:$0xff]  ;;  %v121_v16 = vld [vmem:[#allocation7 + $0xa8] sm:$0xff]  ;;  %v1551_v17 = vpack.c.bf16 %v103_v12, %v102_v11  ;;  %v2053_v18 = vpack.c.bf16 %v253_v14, %v252_v13  ;;  %v254_v19 = vld [vmem:[#allocation9 + $0x10] sm:$0xff]  ;;  %p1910_p4 = scmp.ne.s32.totalorder %s1009_s24, %s1909_s25  ;;  %p1915_p6 = scmp.lt.s32.totalorder %s1909_s25, %s1909_s25 }
  0x4f   :  { %1548 = vmatpush3.bf16.msra.mxu0 %v1547_v9  ;;  %v1553_v20 = vpack.c.bf16 %v121_v16, %v120_v15  ;;  %v104_v21 = vld [vmem:[#allocation7 + $0x20] sm:$0xff]  ;;  %v105_v22 = vld [vmem:[#allocation7 + $0x28] sm:$0xff]  ;;  %v255_v23 = vld [vmem:[#allocation9 + $0x18] sm:$0xff] }
  0x50   :  { %1550 = vmatprep.subr.bf16.mxu0 %v1549_v10  ;;  %1579 = vmatpush3.bf16.msra.mxu1 %v2053_v18  ;;  %v2056_v24 = vpack.c.bf16 %v255_v23, %v254_v19  ;;  %v122_v25 = vld [vmem:[#allocation7 + $0xb0] sm:$0xff]  ;;  %v123_v26 = vld [vmem:[#allocation7 + $0xb8] sm:$0xff]  ;;  %v256_v27 = vld [vmem:[#allocation9 + $0x20] sm:$0xff]  ;;  %v1555_v29 = vpack.c.bf16 %v105_v22, %v104_v21  ;;  %p1916_p7 = por %p1915_p6, %p1914_p5 }
  0x51   :  { %1580 = vmatprep.subr.bf16.mxu1 %v1947_v0  ;;  %v257_v28 = vld [vmem:[#allocation9 + $0x28] sm:$0xff]  ;;  %v1557_v30 = vpack.c.bf16 %v123_v26, %v122_v25  ;;  %v106_v31 = vld [vmem:[#allocation7 + $0x30] sm:$0xff]  ;;  %v107_v32 = vld [vmem:[#allocation7 + $0x38] sm:$0xff] }
  0x52   :  { %v2060_v33 = vpack.c.bf16 %v257_v28, %v256_v27  ;;  %v124_v34 = vld [vmem:[#allocation7 + $0xc0] sm:$0xff]  ;;  %v125_v35 = vld [vmem:[#allocation7 + $0xc8] sm:$0xff]  ;;  %v258_v36 = vld [vmem:[#allocation9 + $0x30] sm:$0xff]  ;;  %v1559_v38 = vpack.c.bf16 %v107_v32, %v106_v31  ;;  %p1917_p8 = pnand %p1916_p7, %p1910_p4 }
  0x53   :  { %1552 = vmatpush3.bf16.msra.mxu0 %v1551_v17  ;;  %v259_v37 = vld [vmem:[#allocation9 + $0x38] sm:$0xff]  ;;  %v1561_v39 = vpack.c.bf16 %v125_v35, %v124_v34  ;;  %v108_v40 = vld [vmem:[#allocation7 + $0x40] sm:$0xff]  ;;  %v109_v41 = vld [vmem:[#allocation7 + $0x48] sm:$0xff] }
  0x54   :  { %1554 = vmatprep.subr.bf16.mxu0 %v1553_v20  ;;  %1582 = vmatpush3.bf16.msra.mxu1 %v2056_v24  ;;  %v2064_v42 = vpack.c.bf16 %v259_v37, %v258_v36  ;;  %v126_v43 = vld [vmem:[#allocation7 + $0xd0] sm:$0xff]  ;;  %v127_v44 = vld [vmem:[#allocation7 + $0xd8] sm:$0xff]  ;;  %v260_v45 = vld [vmem:[#allocation9 + $0x40] sm:$0xff]  ;;  %v1563_v48 = vpack.c.bf16 %v109_v41, %v108_v40 }
  0x55   :  { %1583 = vmatprep.subr.bf16.mxu1 %v1947_v0  ;;  %v261_v46 = vld [vmem:[#allocation9 + $0x48] sm:$0xff]  ;;  %v1565_v49 = vpack.c.bf16 %v127_v44, %v126_v43  ;;  %v110_v50 = vld [vmem:[#allocation7 + $0x50] sm:$0xff]  ;;  %v111_v51 = vld [vmem:[#allocation7 + $0x58] sm:$0xff] }
  0x56   :  { %v85_v47 = vld [vmem:[#allocation4 + $0x8] sm:$0xff]  ;;  %v2068_v52 = vpack.c.bf16 %v261_v46, %v260_v45  ;;  %v128_v53 = vld [vmem:[#allocation7 + $0xe0] sm:$0xff]  ;;  %v262_v55 = vld [vmem:[#allocation9 + $0x50] sm:$0xff]  ;;  %v1567_v57 = vpack.c.bf16 %v111_v51, %v110_v50 }
  0x57   :  { %1556 = vmatpush3.bf16.msra.mxu0 %v1555_v29  ;;  %203 = vmatprep.mubr.f32.mxu0 %v85_v47  ;;  %v129_v54 = vld [vmem:[#allocation7 + $0xe8] sm:$0xff]  ;;  %v263_v56 = vld [vmem:[#allocation9 + $0x58] sm:$0xff]  ;;  %v112_v59 = vld [vmem:[#allocation7 + $0x60] sm:$0xff] }
  0x58   :  { %1558 = vmatprep.subr.bf16.mxu0 %v1557_v30  ;;  %1585 = vmatpush3.bf16.msra.mxu1 %v2060_v33  ;;  %v1569_v58 = vpack.c.bf16 %v129_v54, %v128_v53  ;;  %v113_v60 = vld [vmem:[#allocation7 + $0x68] sm:$0xff]  ;;  %v2072_v61 = vpack.c.bf16 %v263_v56, %v262_v55  ;;  %v130_v62 = vld [vmem:[#allocation7 + $0xf0] sm:$0xff]  ;;  %v131_v63 = vld [vmem:[#allocation7 + $0xf8] sm:$0xff] }
  0x59   :  { %1586 = vmatprep.subr.bf16.mxu1 %v1947_v0  ;;  %v264_v2 = vld [vmem:[#allocation9 + $0x60] sm:$0xff]  ;;  %v265_v3 = vld [vmem:[#allocation9 + $0x68] sm:$0xff]  ;;  %v1571_v4 = vpack.c.bf16 %v113_v60, %v112_v59  ;;  %v1573_v5 = vpack.c.bf16 %v131_v63, %v130_v62  ;;  %v114_v6 = vld [vmem:[#allocation7 + $0x70] sm:$0xff] }
  0x5a   :  { %v115_v7 = vld [vmem:[#allocation7 + $0x78] sm:$0xff]  ;;  %v2076_v8 = vpack.c.bf16 %v265_v3, %v264_v2  ;;  %v266_v9 = vld [vmem:[#allocation9 + $0x70] sm:$0xff]  ;;  %v84_v13 = vld [vmem:[#allocation4] sm:$0xff] }
  0x5b   :  { %1560 = vmatpush3.bf16.msra.mxu0 %v1559_v38  ;;  %v267_v10 = vld [vmem:[#allocation9 + $0x78] sm:$0xff]  ;;  %v1575_v11 = vpack.c.bf16 %v115_v7, %v114_v6  ;;  %v86_v15 = vld [vmem:[#allocation4 + $0x10] sm:$0xff]  ;;  %v89_v16 = vld [vmem:[#allocation4 + $0x28] sm:$0xff] }
  0x5c   :  { %1562 = vmatprep.subr.bf16.mxu0 %v1561_v39  ;;  %1588 = vmatpush3.bf16.msra.mxu1 %v2064_v42  ;;  %v2080_v12 = vpack.c.bf16 %v267_v10, %v266_v9  ;;  %v87_v14 = vld [vmem:[#allocation4 + $0x18] sm:$0xff]  ;;  %v88_v17 = vld [vmem:[#allocation4 + $0x20] sm:$0xff]  ;;  %v90_v20 = vld [vmem:[#allocation4 + $0x30] sm:$0xff] }
  0x5d   :  { %1589 = vmatprep.subr.bf16.mxu1 %v1947_v0  ;;  %v91_v19 = vld [vmem:[#allocation4 + $0x38] sm:$0xff]  ;;  %v93_v21 = vld [vmem:[#allocation4 + $0x48] sm:$0xff]  ;;  %v92_v22 = vld [vmem:[#allocation4 + $0x40] sm:$0xff] }
  0x5e   :  { %v95_v23 = vld [vmem:[#allocation4 + $0x58] sm:$0xff]  ;;  %v94_v25 = vld [vmem:[#allocation4 + $0x50] sm:$0xff]  ;;  %v97_v26 = vld [vmem:[#allocation4 + $0x68] sm:$0xff] }
  0x5f   :  { %1564 = vmatpush3.bf16.msra.mxu0 %v1563_v48  ;;  %v96_v27 = vld [vmem:[#allocation4 + $0x60] sm:$0xff]  ;;  %v99_v28 = vld [vmem:[#allocation4 + $0x78] sm:$0xff]  ;;  %v98_v29 = vld [vmem:[#allocation4 + $0x70] sm:$0xff] }
  0x60   :  { %1566 = vmatprep.subr.bf16.mxu0 %v1565_v49  ;;  %1591 = vmatpush3.bf16.msra.mxu1 %v2068_v52  ;;  %v2126_v32 = vld [vmem:[%s2267_s3] ss:$0 sm:$0xff] }
  0x61   :  { %1592 = vmatprep.subr.bf16.mxu1 %v1947_v0 }
  0x63   :  { %1568 = vmatpush3.bf16.msra.mxu0 %v1567_v57 }
  0x64   :  { %1570 = vmatprep.subr.bf16.mxu0 %v1569_v58  ;;  %1594 = vmatpush3.bf16.msra.mxu1 %v2072_v61 }
  0x65   :  { %1595 = vmatprep.subr.bf16.mxu1 %v1947_v0 }
  0x67   :  { %1572 = vmatpush3.bf16.msra.mxu0 %v1571_v4 }
  0x68   :  { %1574 = vmatprep.subr.bf16.mxu0 %v1573_v5  ;;  %1597 = vmatpush3.bf16.msra.mxu1 %v2076_v8 }
  0x69   :  { %1598 = vmatprep.subr.bf16.mxu1 %v1947_v0 }
  0x6b   :  { %1576 = vmatpush3.bf16.msra.mxu0 %v1575_v11 }
  0x6c   :  { %1601 = vmatprep.subr.bf16.mxu0 %v1947_v0  ;;  %1600 = vmatpush3.bf16.msra.mxu1 %v2080_v12 }
  0x6d   :  { %1625 = vmatprep.subr.bf16.mxu1 %v1947_v0 }
  0x6e   :  { %204 = vmatmul.mubr.f32.vlgmr.msra.gmra.mrb[0].mxu0 %v84_v13 }
  0x6f   :  { %1603 = vmatpush3.bf16.msra.mxu0 %v2053_v18  ;;  %208 = vmatprep.mubr.f32.mxu0 %v87_v14 }
  0x70   :  { %1263 = vmatmul.mubr.f32.vlgmr.msra.gmra.mrb[0].mxu1 %v1949_v1  ;;  %1604 = vmatprep.subr.bf16.mxu0 %v1947_v0 }
  0x71   :  { %1627 = vmatpush3.bf16.msra.mxu1 %v2053_v18  ;;  %1332 = vmatprep.mubr.msk.f32.mxu1 %vm1948_vm0, %v1949_v1 }
  0x72   :  { %209 = vmatmul.mubr.f32.gmra.mrb[2].mxu0 %v86_v15  ;;  %1628 = vmatprep.subr.bf16.mxu1 %v1947_v0 }
  0x73   :  { %1606 = vmatpush3.bf16.msra.mxu0 %v2056_v24  ;;  %213 = vmatprep.mubr.f32.mxu0 %v89_v16 }
  0x74   :  { %1607 = vmatprep.subr.bf16.mxu0 %v1947_v0 }
  0x75   :  { %1630 = vmatpush3.bf16.msra.mxu1 %v2056_v24 }
  0x76   :  { %214 = vmatmul.mubr.f32.gmra.mrb[4].mxu0 %v88_v17  ;;  %1631 = vmatprep.subr.bf16.mxu1 %v1947_v0 }
  0x77   :  { %1609 = vmatpush3.bf16.msra.mxu0 %v2060_v33  ;;  %218 = vmatprep.mubr.f32.mxu0 %v91_v19 }
  0x78   :  { %1610 = vmatprep.subr.bf16.mxu0 %v1947_v0 }
  0x79   :  { %1633 = vmatpush3.bf16.msra.mxu1 %v2060_v33 }
  0x7a   :  { %219 = vmatmul.mubr.f32.gmra.mrb[6].mxu0 %v90_v20  ;;  %1634 = vmatprep.subr.bf16.mxu1 %v1947_v0 }
  0x7b   :  { %1612 = vmatpush3.bf16.msra.mxu0 %v2064_v42  ;;  %223 = vmatprep.mubr.f32.mxu0 %v93_v21 }
  0x7c   :  { %1613 = vmatprep.subr.bf16.mxu0 %v1947_v0 }
  0x7d   :  { %1636 = vmatpush3.bf16.msra.mxu1 %v2064_v42 }
  0x7e   :  { %1637 = vmatprep.subr.bf16.mxu1 %v1947_v0  ;;  %224 = vmatmul.mubr.f32.gmra.mrb[8].mxu0 %v92_v22 }
  0x7f   :  { %1615 = vmatpush3.bf16.msra.mxu0 %v2068_v52  ;;  %228 = vmatprep.mubr.f32.mxu0 %v95_v23 }
  0x80   :  { %1616 = vmatprep.subr.bf16.mxu0 %v1947_v0 }
  0x81   :  { %1639 = vmatpush3.bf16.msra.mxu1 %v2068_v52 }
  0x82   :  { %1640 = vmatprep.subr.bf16.mxu1 %v1947_v0  ;;  %229 = vmatmul.mubr.f32.gmra.mrb[10].mxu0 %v94_v25 }
  0x83   :  { %1618 = vmatpush3.bf16.msra.mxu0 %v2072_v61  ;;  %233 = vmatprep.mubr.f32.mxu0 %v97_v26  ;;  %v909_v26 = vld [vmem:[#allocation10 + $0x8] sm:$0xff] }
  0x84   :  { %1619 = vmatprep.subr.bf16.mxu0 %v1947_v0 }
  0x85   :  { %1642 = vmatpush3.bf16.msra.mxu1 %v2072_v61 }
  0x86   :  { %1643 = vmatprep.subr.bf16.mxu1 %v1947_v0  ;;  %234 = vmatmul.mubr.f32.gmra.mrb[12].mxu0 %v96_v27  ;;  %v910_v27 = vld [vmem:[#allocation10 + $0x10] sm:$0xff] }
  0x87   :  { %1621 = vmatpush3.bf16.msra.mxu0 %v2076_v8  ;;  %238 = vmatprep.mubr.f32.mxu0 %v99_v28  ;;  %v911_v28 = vld [vmem:[#allocation10 + $0x18] sm:$0xff] }
  0x88   :  { %1622 = vmatprep.subr.bf16.mxu0 %v1947_v0 }
  0x89   :  { %1645 = vmatpush3.bf16.msra.mxu1 %v2076_v8 }
  0x8a   :  { %1646 = vmatprep.subr.bf16.mxu1 %v1947_v0  ;;  %239 = vmatmul.mubr.f32.gmra.mrb[14].mxu0 %v98_v29  ;;  %v1773_v29 = vpack.c.bf16 %v911_v28, %v910_v27 }
  0x8b   :  { %1624 = vmatpush3.bf16.msra.mxu0 %v2080_v12  ;;  %1297 = vmatprep.mubr.msk.f32.mxu0 %vm1948_vm0, %v1949_v1 }
  0x8c   :  { %1649 = vmatprep.subr.bf16.mxu0 %v1947_v0 }
  0x8d   :  { %1648 = vmatpush3.bf16.msra.mxu1 %v2080_v12 }
  0x8e   :  { %1673 = vmatprep.subr.bf16.mxu1 %v1947_v0 }
 0x141   :  { %v1053_v30 = vpop.f32.mrb[0].mxu0 }
 0x142   :  { %v1054_v31 = vpop.f32.mrb[1].mxu0 }
 0x143   :  { %v1055_v34 = vadd.f32 %v1054_v31, %v1053_v30  ;;  %v340_v35 = vpop.f32.mrb[0].mxu1  ;;  %v913_v30 = vld [vmem:[#allocation10 + $0x28] sm:$0xff] }
 0x144   :  { %v1264_v36 = vpop.f32.mrb[1].mxu1 }
 0x145   :  { %v206_v37 = vadd.f32 %v1055_v34, %v2126_v32  ;;  %v1056_v38 = vpop.f32.mrb[2].mxu0  ;;  %v914_v34 = vld [vmem:[#allocation10 + $0x30] sm:$0xff] }
 0x146   :  { %v1057_v39 = vpop.f32.mrb[3].mxu0 }
 0x147   :  { %v344_v40 = vadd.f32 %v340_v35, %v206_v37  ;;  %v1058_v41 = vadd.f32 %v1057_v39, %v1056_v38  ;;  %v915_v35 = vld [vmem:[#allocation10 + $0x38] sm:$0xff]  ;;  %v917_v37 = vld [vmem:[#allocation10 + $0x48] sm:$0xff] }
 0x148   :  { %v1779_v36 = vpack.c.bf16 %v915_v35, %v914_v34 }
 0x149   :  { %1805 = vtanh.f32 %v344_v40  ;;  %v1059_v43 = vpop.f32.mrb[4].mxu0  ;;  %v211_v2 = vadd.f32 %v1058_v41, %v2126_v32 }
 0x14a   :  { %v1060_v44 = vpop.f32.mrb[5].mxu0 }
 0x14b   :  { %v1061_v45 = vadd.f32 %v1060_v44, %v1059_v43 }
 0x14d   :  { %v1062_v46 = vpop.f32.mrb[6].mxu0  ;;  %v216_v7 = vadd.f32 %v1061_v45, %v2126_v32  ;;  %v918_v45 = vld [vmem:[#allocation10 + $0x50] sm:$0xff] }
 0x14e   :  { %v1063_v47 = vpop.f32.mrb[7].mxu0 }
 0x14f   :  { %v2129_v48 = vadd.f32 %v1063_v47, %v1062_v46  ;;  %v919_v46 = vld [vmem:[#allocation10 + $0x58] sm:$0xff] }
 0x150   :  { %v1785_v47 = vpack.c.bf16 %v919_v46, %v918_v45 }
 0x151   :  { %v1065_v50 = vpop.f32.mrb[8].mxu0  ;;  %v221_v14 = vadd.f32 %v2129_v48, %v2126_v32  ;;  %v920_v48 = vld [vmem:[#allocation10 + $0x60] sm:$0xff] }
 0x152   :  { %v1066_v51 = vpop.f32.mrb[9].mxu0 }
 0x153   :  { %v1806_v49 = vpop.eup %1805  ;;  %v2149_v53 = vadd.f32 %v1066_v51, %v1065_v50  ;;  %v922_v51 = vld [vmem:[#allocation10 + $0x70] sm:$0xff] }
 0x154   :  { %1298 = vmatmul.mubr.f32.vlgmr.msra.gmra.mrb[16].mxu0 %v1806_v49  ;;  %v921_v49 = vld [vmem:[#allocation10 + $0x68] sm:$0xff] }
 0x155   :  { %1651 = vmatpush3.bf16.msra.mxu0 %v2053_v18  ;;  %1367 = vmatprep.mubr.msk.f32.mxu0 %vm1948_vm0, %v1949_v1  ;;  %v1068_v54 = vpop.f32.mrb[10].mxu0  ;;  %v226_v20 = vadd.f32 %v2149_v53, %v2126_v32  ;;  %v1788_v50 = vpack.c.bf16 %v921_v49, %v920_v48  ;;  %v923_v53 = vld [vmem:[#allocation10 + $0x78] sm:$0xff] }
 0x156   :  { %1652 = vmatprep.subr.bf16.mxu0 %v1947_v0  ;;  %v1069_v55 = vpop.f32.mrb[11].mxu0 }
 0x157   :  { %v2151_v56 = vadd.f32 %v1069_v55, %v1068_v54  ;;  %v1791_v54 = vpack.c.bf16 %v923_v53, %v922_v51 }
 0x159   :  { %1654 = vmatpush3.bf16.msra.mxu0 %v2056_v24  ;;  %v1071_v57 = vpop.f32.mrb[12].mxu0 }
 0x15a   :  { %1655 = vmatprep.subr.bf16.mxu0 %v1947_v0  ;;  %v1072_v58 = vpop.f32.mrb[13].mxu0 }
 0x15b   :  { %v2153_v59 = vadd.f32 %v1072_v58, %v1071_v57 }
 0x15d   :  { %1657 = vmatpush3.bf16.msra.mxu0 %v2060_v33  ;;  %v1074_v60 = vpop.f32.mrb[14].mxu0  ;;  %v236_v39 = vadd.f32 %v2153_v59, %v2126_v32 }
 0x15e   :  { %1658 = vmatprep.subr.bf16.mxu0 %v1947_v0  ;;  %v1075_v62 = vpop.f32.mrb[15].mxu0 }
 0x15f   :  { %v2155_v63 = vadd.f32 %v1075_v62, %v1074_v60  ;;  %v1020_v60 = vld [vmem:[%s2269_s5] ss:$0 sm:$0xff] }
 0x161   :  { %1660 = vmatpush3.bf16.msra.mxu0 %v2064_v42  ;;  %v241_v55 = vadd.f32 %v2155_v63, %v2126_v32 }
 0x162   :  { %1661 = vmatprep.subr.bf16.mxu0 %v1947_v0 }
 0x165   :  { %1663 = vmatpush3.bf16.msra.mxu0 %v2068_v52 }
 0x166   :  { %1664 = vmatprep.subr.bf16.mxu0 %v1947_v0 }
 0x169   :  { %1666 = vmatpush3.bf16.msra.mxu0 %v2072_v61 }
 0x16a   :  { %1667 = vmatprep.subr.bf16.mxu0 %v1947_v0 }
 0x16d   :  { %1669 = vmatpush3.bf16.msra.mxu0 %v2076_v8 }
 0x16e   :  { %1670 = vmatprep.subr.bf16.mxu0 %v1947_v0 }
 0x171   :  { %1672 = vmatpush3.bf16.msra.mxu0 %v2080_v12 }
 0x172   :  { %1697 = vmatprep.subr.bf16.mxu0 %v1947_v0 }
 0x227   :  { %v419_v3 = vpop.f32.mrb[16].mxu0 }
 0x228   :  { %v423_v4 = vadd.f32 %v419_v3, %v211_v2  ;;  %v1299_v5 = vpop.f32.mrb[17].mxu0 }
 0x22a   :  { %1807 = vtanh.f32 %v423_v4 }
 0x234   :  { %v1808_v6 = vpop.eup %1807 }
 0x235   :  { %1333 = vmatmul.mubr.f32.vlgmr.msra.gmra.mrb[2].mxu1 %v1808_v6 }
 0x236   :  { %1675 = vmatpush3.bf16.msra.mxu1 %v2053_v18  ;;  %1402 = vmatprep.mubr.msk.f32.mxu1 %vm1948_vm0, %v1949_v1 }
 0x237   :  { %1676 = vmatprep.subr.bf16.mxu1 %v1947_v0 }
 0x23a   :  { %1678 = vmatpush3.bf16.msra.mxu1 %v2056_v24 }
 0x23b   :  { %1679 = vmatprep.subr.bf16.mxu1 %v1947_v0 }
 0x23e   :  { %1681 = vmatpush3.bf16.msra.mxu1 %v2060_v33 }
 0x23f   :  { %1682 = vmatprep.subr.bf16.mxu1 %v1947_v0 }
 0x242   :  { %1684 = vmatpush3.bf16.msra.mxu1 %v2064_v42 }
 0x243   :  { %1685 = vmatprep.subr.bf16.mxu1 %v1947_v0 }
 0x246   :  { %1687 = vmatpush3.bf16.msra.mxu1 %v2068_v52 }
 0x247   :  { %1688 = vmatprep.subr.bf16.mxu1 %v1947_v0 }
 0x24a   :  { %1690 = vmatpush3.bf16.msra.mxu1 %v2072_v61 }
 0x24b   :  { %1691 = vmatprep.subr.bf16.mxu1 %v1947_v0 }
 0x24e   :  { %1693 = vmatpush3.bf16.msra.mxu1 %v2076_v8 }
 0x24f   :  { %1694 = vmatprep.subr.bf16.mxu1 %v1947_v0 }
 0x252   :  { %1696 = vmatpush3.bf16.msra.mxu1 %v2080_v12 }
 0x253   :  { %1721 = vmatprep.subr.bf16.mxu1 %v1947_v0 }
 0x308   :  { %v498_v9 = vpop.f32.mrb[2].mxu1 }
 0x309   :  { %v502_v10 = vadd.f32 %v498_v9, %v216_v7  ;;  %v1334_v11 = vpop.f32.mrb[3].mxu1 }
 0x30b   :  { %1809 = vtanh.f32 %v502_v10 }
 0x315   :  { %v1810_v13 = vpop.eup %1809 }
 0x316   :  { %1368 = vmatmul.mubr.f32.vlgmr.msra.gmra.mrb[18].mxu0 %v1810_v13 }
 0x317   :  { %1699 = vmatpush3.bf16.msra.mxu0 %v2053_v18  ;;  %1437 = vmatprep.mubr.msk.f32.mxu0 %vm1948_vm0, %v1949_v1 }
 0x318   :  { %1700 = vmatprep.subr.bf16.mxu0 %v1947_v0 }
 0x31b   :  { %1702 = vmatpush3.bf16.msra.mxu0 %v2056_v24 }
 0x31c   :  { %1703 = vmatprep.subr.bf16.mxu0 %v1947_v0 }
 0x31f   :  { %1705 = vmatpush3.bf16.msra.mxu0 %v2060_v33 }
 0x320   :  { %1706 = vmatprep.subr.bf16.mxu0 %v1947_v0 }
 0x323   :  { %1708 = vmatpush3.bf16.msra.mxu0 %v2064_v42 }
 0x324   :  { %1709 = vmatprep.subr.bf16.mxu0 %v1947_v0 }
 0x327   :  { %1711 = vmatpush3.bf16.msra.mxu0 %v2068_v52 }
 0x328   :  { %1712 = vmatprep.subr.bf16.mxu0 %v1947_v0 }
 0x32b   :  { %1714 = vmatpush3.bf16.msra.mxu0 %v2072_v61 }
 0x32c   :  { %1715 = vmatprep.subr.bf16.mxu0 %v1947_v0 }
 0x32f   :  { %1717 = vmatpush3.bf16.msra.mxu0 %v2076_v8 }
 0x330   :  { %1718 = vmatprep.subr.bf16.mxu0 %v1947_v0 }
 0x333   :  { %1720 = vmatpush3.bf16.msra.mxu0 %v2080_v12 }
 0x334   :  { %1745 = vmatprep.subr.bf16.mxu0 %v1947_v0 }
 0x3e9   :  { %v577_v15 = vpop.f32.mrb[18].mxu0 }
 0x3ea   :  { %v581_v16 = vadd.f32 %v577_v15, %v221_v14  ;;  %v1369_v17 = vpop.f32.mrb[19].mxu0 }
 0x3ec   :  { %1811 = vtanh.f32 %v581_v16 }
 0x3f6   :  { %v1812_v19 = vpop.eup %1811 }
 0x3f7   :  { %1403 = vmatmul.mubr.f32.vlgmr.msra.gmra.mrb[4].mxu1 %v1812_v19 }
 0x3f8   :  { %1723 = vmatpush3.bf16.msra.mxu1 %v2053_v18  ;;  %1472 = vmatprep.mubr.msk.f32.mxu1 %vm1948_vm0, %v1949_v1 }
 0x3f9   :  { %1724 = vmatprep.subr.bf16.mxu1 %v1947_v0 }
 0x3fc   :  { %1726 = vmatpush3.bf16.msra.mxu1 %v2056_v24 }
 0x3fd   :  { %1727 = vmatprep.subr.bf16.mxu1 %v1947_v0 }
 0x400   :  { %1729 = vmatpush3.bf16.msra.mxu1 %v2060_v33 }
 0x401   :  { %1730 = vmatprep.subr.bf16.mxu1 %v1947_v0 }
 0x404   :  { %1732 = vmatpush3.bf16.msra.mxu1 %v2064_v42 }
 0x405   :  { %1733 = vmatprep.subr.bf16.mxu1 %v1947_v0 }
 0x408   :  { %1735 = vmatpush3.bf16.msra.mxu1 %v2068_v52 }
 0x409   :  { %1736 = vmatprep.subr.bf16.mxu1 %v1947_v0 }
 0x40c   :  { %1738 = vmatpush3.bf16.msra.mxu1 %v2072_v61 }
 0x40d   :  { %1739 = vmatprep.subr.bf16.mxu1 %v1947_v0 }
 0x410   :  { %1741 = vmatpush3.bf16.msra.mxu1 %v2076_v8 }
 0x411   :  { %1742 = vmatprep.subr.bf16.mxu1 %v1947_v0 }
 0x414   :  { %1744 = vmatpush3.bf16.msra.mxu1 %v2080_v12 }
 0x415   :  { %1769 = vmatprep.subr.bf16.mxu1 %v1947_v0 }
 0x4ca   :  { %v656_v21 = vpop.f32.mrb[4].mxu1 }
 0x4cb   :  { %v660_v22 = vadd.f32 %v656_v21, %v226_v20  ;;  %v1404_v23 = vpop.f32.mrb[5].mxu1 }
 0x4cd   :  { %1813 = vtanh.f32 %v660_v22 }
 0x4d7   :  { %v1814_v25 = vpop.eup %1813 }
 0x4d8   :  { %1438 = vmatmul.mubr.f32.vlgmr.msra.gmra.mrb[20].mxu0 %v1814_v25 }
 0x4d9   :  { %1747 = vmatpush3.bf16.msra.mxu0 %v2053_v18  ;;  %1507 = vmatprep.mubr.msk.f32.mxu0 %vm1948_vm0, %v1949_v1  ;;  %v231_v18 = vadd.f32 %v2151_v56, %v2126_v32 }
 0x4da   :  { %1748 = vmatprep.subr.bf16.mxu0 %v1947_v0 }
 0x4dd   :  { %1750 = vmatpush3.bf16.msra.mxu0 %v2056_v24 }
 0x4de   :  { %1751 = vmatprep.subr.bf16.mxu0 %v1947_v0 }
 0x4e1   :  { %1753 = vmatpush3.bf16.msra.mxu0 %v2060_v33 }
 0x4e2   :  { %1754 = vmatprep.subr.bf16.mxu0 %v1947_v0 }
 0x4e5   :  { %1756 = vmatpush3.bf16.msra.mxu0 %v2064_v42 }
 0x4e6   :  { %1757 = vmatprep.subr.bf16.mxu0 %v1947_v0 }
 0x4e9   :  { %1759 = vmatpush3.bf16.msra.mxu0 %v2068_v52 }
 0x4ea   :  { %1760 = vmatprep.subr.bf16.mxu0 %v1947_v0 }
 0x4ed   :  { %1762 = vmatpush3.bf16.msra.mxu0 %v2072_v61  ;;  %v908_v61 = vld [vmem:[#allocation10] sm:$0xff] }
 0x4ee   :  { %1763 = vmatprep.subr.bf16.mxu0 %v1947_v0 }
 0x4f1   :  { %1765 = vmatpush3.bf16.msra.mxu0 %v2076_v8  ;;  %v1770_v8 = vpack.c.bf16 %v909_v26, %v908_v61 }
 0x4f2   :  { %1766 = vmatprep.subr.bf16.mxu0 %v1947_v0 }
 0x4f5   :  { %1768 = vmatpush3.bf16.msra.mxu0 %v2080_v12  ;;  %v912_v12 = vld [vmem:[#allocation10 + $0x20] sm:$0xff] }
 0x4f6   :  { %v1776_v31 = vpack.c.bf16 %v913_v30, %v912_v12 }
 0x5ab   :  { %v735_v24 = vpop.f32.mrb[20].mxu0 }
 0x5ac   :  { %v739_v33 = vadd.f32 %v735_v24, %v231_v18  ;;  %v1439_v42 = vpop.f32.mrb[21].mxu0 }
 0x5ae   :  { %1815 = vtanh.f32 %v739_v33 }
 0x5b8   :  { %v1816_v52 = vpop.eup %1815 }
 0x5b9   :  { %1473 = vmatmul.mubr.f32.vlgmr.msra.gmra.mrb[6].mxu1 %v1816_v52 }
 0x5ba   :  { %1542 = vmatprep.mubr.msk.f32.mxu1 %vm1948_vm0, %v1949_v1  ;;  %1771 = vmatpush3.bf16.msra.mxu1 %v1770_v8  ;;  %v916_v1 = vld [vmem:[#allocation10 + $0x40] sm:$0xff] }
 0x5bb   :  { %1772 = vmatprep.subr.bf16.mxu1 %v1947_v0  ;;  %v1782_v38 = vpack.c.bf16 %v917_v37, %v916_v1 }
 0x5be   :  { %1774 = vmatpush3.bf16.msra.mxu1 %v1773_v29 }
 0x5bf   :  { %1775 = vmatprep.subr.bf16.mxu1 %v1947_v0 }
 0x5c2   :  { %1777 = vmatpush3.bf16.msra.mxu1 %v1776_v31 }
 0x5c3   :  { %1778 = vmatprep.subr.bf16.mxu1 %v1947_v0 }
 0x5c6   :  { %1780 = vmatpush3.bf16.msra.mxu1 %v1779_v36 }
 0x5c7   :  { %1781 = vmatprep.subr.bf16.mxu1 %v1947_v0 }
 0x5ca   :  { %1783 = vmatpush3.bf16.msra.mxu1 %v1782_v38 }
 0x5cb   :  { %1784 = vmatprep.subr.bf16.mxu1 %v1947_v0 }
 0x5ce   :  { %1786 = vmatpush3.bf16.msra.mxu1 %v1785_v47 }
 0x5cf   :  { %1787 = vmatprep.subr.bf16.mxu1 %v1947_v0 }
 0x5d2   :  { %1789 = vmatpush3.bf16.msra.mxu1 %v1788_v50 }
 0x5d3   :  { %1790 = vmatprep.subr.bf16.mxu1 %v1947_v0 }
 0x5d6   :  { %1792 = vmatpush3.bf16.msra.mxu1 %v1791_v54 }
 0x68c   :  { %v814_v40 = vpop.f32.mrb[6].mxu1 }
 0x68d   :  { %v818_v41 = vadd.f32 %v814_v40, %v236_v39  ;;  %v1474_v43 = vpop.f32.mrb[7].mxu1 }
 0x68f   :  { %1817 = vtanh.f32 %v818_v41 }
 0x699   :  { %v1818_v44 = vpop.eup %1817 }
 0x69a   :  { %1508 = vmatmul.mubr.f32.vlgmr.msra.gmra.mrb[22].mxu0 %v1818_v44 }
 0x76d   :  { %v893_v56 = vpop.f32.mrb[22].mxu0 }
 0x76e   :  { %v897_v57 = vadd.f32 %v893_v56, %v241_v55  ;;  %v1509_v58 = vpop.f32.mrb[23].mxu0 }
 0x770   :  { %1819 = vtanh.f32 %v897_v57 }
 0x77a   :  { %v1820_v59 = vpop.eup %1819 }
 0x77b   :  { %1543 = vmatmul.mubr.f32.vlgmr.msra.gmra.mrb[8].mxu1 %v1820_v59 }
 0x84e   :  { %v997_v62 = vpop.f32.mrb[8].mxu1 }
 0x84f   :  { %v998_v2 = vadd.f32 %v1020_v60, %v997_v62  ;;  %v1544_v3 = vpop.f32.mrb[9].mxu1 }
 0x851   :  { %1001 = vst [vmem:[#allocation12] sm:$0xff] %v998_v2 }
 0x852   :  { %1920 = shalt.err (!%p1917_p8)
}
 0x853   :  { %s1921_s28 = scalar_lea.hbm %s2270_s6, 128 }
 0x854   :  { %p1922_p9 = scmp.ne.s32.totalorder %s2270_s6, %s1921_s28  ;;  %p1925_p10 = scmp.lt.u32.totalorder %s1921_s28, %s2270_s6 }
 0x856   :  { %p1927_p11 = pnand %p1925_p10, %p1922_p9 }
 0x858   :  { %1930 = shalt.err (!%p1927_p11)
}
 0x859   :  { %1011 = dma.vmem_to_hbm [thread:$0]  %s1009_s24, 128, %s2270_s6, [#allocation6]  }
 0x85a   :  { %1937 = dma.done.wait [#allocation6], 128  }
 0x85b   :  { %1938 = vsyncadd [#allocation6], 4294967168 }
 0x85c   :  { %1015 = vsyncpa [#allocation5], 1 }
 0x85d   :  { %1016 = vsyncpa [#allocation8], 1 }
 0x85e   :  { %1017 = vsyncpa [#allocation11], 1 }
 0x85f   :  { %1018 = vsyncpa [#allocation6], 1 }

</bundles_post_ra>
